<compile_context>
chip_gen: v5e
topology: v5e:2x2
jax: 0.10.0
libtpu: 0.0.40
codegen_flags: <defaults>
</compile_context>

<pallas_src>
import jax
import jax.numpy as jnp
from jax.experimental import pallas as pl
from jax.experimental.pallas import tpu as pltpu


def _round_up(x, m):
    return ((x + m - 1) // m) * m


def actor_kernel(x_ref, w1_ref, b1_ref, w2_ref, b2_ref, w3_ref, b3_ref, o_ref):
    # MXU matmuls take bf16 operands with f32 accumulation; all elementwise work
    # (bias add, ReLU, tanh) stays in f32.
    x = x_ref[...].astype(jnp.bfloat16)
    h1 = jnp.dot(x, w1_ref[...], preferred_element_type=jnp.float32) + b1_ref[...]
    h1 = jnp.maximum(h1, 0.0)                                   # ReLU (VPU, f32)

    h2 = jnp.dot(h1.astype(jnp.bfloat16), w2_ref[...],
                 preferred_element_type=jnp.float32) + b2_ref[...]
    h2 = jnp.maximum(h2, 0.0)                                   # ReLU (VPU, f32)

    a = jnp.dot(h2.astype(jnp.bfloat16), w3_ref[...],
                preferred_element_type=jnp.float32) + b3_ref[...]
    o_ref[...] = jnp.tanh(a).astype(o_ref.dtype)                # tanh (EUP, f32)


def actor_forward(state, params, *, tile_b=256):
    """state: (B, num_inputs) f32.  params: bf16 weights, f32 (1, out) biases."""
    w1, b1, w2, b2, w3, b3 = params
    B, num_inputs = state.shape
    num_actions = w3.shape[1]

    # Batch tile: multiple of 8 sublanes, capped at tile_b; pad batch if needed.
    tb = min(tile_b, _round_up(B, 8))
    b_pad = _round_up(B, tb)
    if b_pad != B:
        state = jnp.pad(state, ((0, b_pad - B), (0, 0)))

    # Weights/biases: constant block index -> VMEM-resident across grid steps.
    resident = lambda shape: pl.BlockSpec(shape, lambda i: (0, 0))

    out = pl.pallas_call(
        actor_kernel,
        out_shape=jax.ShapeDtypeStruct((b_pad, num_actions), state.dtype),
        grid=(b_pad // tb,),
        in_specs=[
            pl.BlockSpec((tb, num_inputs), lambda i: (i, 0)),   # state tile
            resident(w1.shape), resident(b1.shape),
            resident(w2.shape), resident(b2.shape),
            resident(w3.shape), resident(b3.shape),
        ],
        out_specs=pl.BlockSpec((tb, num_actions), lambda i: (i, 0)),
        compiler_params=pltpu.CompilerParams(
            dimension_semantics=("parallel",),                  # both TCs on v7x
        ),
    )(state, w1, b1, w2, b2, w3, b3)

    return out[:B] if b_pad != B else out


def init_actor_params(key, num_inputs, num_actions, hidden_size=256):
    """nn.Linear-style uniform(-1/sqrt(fan_in), +1/sqrt(fan_in)) init.

    Weights are stored in bf16 (MXU operands), biases in f32 (1, out) rows.
    """
    ks = jax.random.split(key, 6)

    def linear(kw, kb, fan_in, fan_out):
        bound = 1.0 / jnp.sqrt(fan_in)
        w = jax.random.uniform(kw, (fan_in, fan_out), jnp.float32, -bound, bound)
        b = jax.random.uniform(kb, (1, fan_out), jnp.float32, -bound, bound)
        return w.astype(jnp.bfloat16), b

    w1, b1 = linear(ks[0], ks[1], num_inputs, hidden_size)
    w2, b2 = linear(ks[2], ks[3], hidden_size, hidden_size)
    w3, b3 = linear(ks[4], ks[5], hidden_size, num_actions)
    return (w1, b1, w2, b2, w3, b3)


def actor_reference(state, params):
    """Pure-JAX reference with the same bf16-operand / f32-accumulate numerics."""
    w1, b1, w2, b2, w3, b3 = params
    h1 = jnp.dot(state.astype(jnp.bfloat16), w1,
                 preferred_element_type=jnp.float32) + b1
    h1 = jnp.maximum(h1, 0.0)
    h2 = jnp.dot(h1.astype(jnp.bfloat16), w2,
                 preferred_element_type=jnp.float32) + b2
    h2 = jnp.maximum(h2, 0.0)
    a = jnp.dot(h2.astype(jnp.bfloat16), w3,
                preferred_element_type=jnp.float32) + b3
    return jnp.tanh(a)


if __name__ == "__main__":
    key = jax.random.PRNGKey(0)
    k_params, k_state = jax.random.split(key)

    batch = 128
    num_inputs = 32
    num_actions = 8
    hidden_size = 256
    tile_b = 64          # -> grid=(2,), exercises batch tiling + resident weights

    params = init_actor_params(k_params, num_inputs, num_actions, hidden_size)
    state = jax.random.normal(k_state, (batch, num_inputs), jnp.float32)

    out = actor_forward(state, params, tile_b=tile_b)
    out = jax.block_until_ready(out)

    ref = actor_reference(state, params)
    assert out.shape == (batch, num_actions), out.shape
    assert jnp.allclose(out, ref, atol=1e-3, rtol=1e-3), "mismatch vs reference"

    print("KERNEL_OK")
</pallas_src>

<mosaic_0001>
module attributes {stable_mosaic.version = 11 : i64} {
  func.func @actor_kernel(%arg0: i32, %arg1: memref<64x32xf32, #tpu.memory_space<vmem>>, %arg2: memref<32x256xbf16, #tpu.memory_space<vmem>>, %arg3: memref<1x256xf32, #tpu.memory_space<vmem>>, %arg4: memref<256x256xbf16, #tpu.memory_space<vmem>>, %arg5: memref<1x256xf32, #tpu.memory_space<vmem>>, %arg6: memref<256x8xbf16, #tpu.memory_space<vmem>>, %arg7: memref<1x8xf32, #tpu.memory_space<vmem>>, %arg8: memref<64x8xf32, #tpu.memory_space<vmem>>) attributes {dimension_semantics = [#tpu.dimension_semantics<parallel>], iteration_bounds = array<i64: 2>, scalar_prefetch = 0 : i64, scratch_operands = 0 : i64, tpu.core_type = #tpu.core_type<tc>, window_params = [{transform_indices = @transform_0, window_bounds = array<i64: 64, 32>}, {pipeline_mode = #tpu.pipeline_mode<synchronous>, transform_indices = @transform_1, window_bounds = array<i64: 32, 256>}, {pipeline_mode = #tpu.pipeline_mode<synchronous>, transform_indices = @transform_2, window_bounds = array<i64: 1, 256>}, {pipeline_mode = #tpu.pipeline_mode<synchronous>, transform_indices = @transform_3, window_bounds = array<i64: 256, 256>}, {pipeline_mode = #tpu.pipeline_mode<synchronous>, transform_indices = @transform_4, window_bounds = array<i64: 1, 256>}, {pipeline_mode = #tpu.pipeline_mode<synchronous>, transform_indices = @transform_5, window_bounds = array<i64: 256, 8>}, {pipeline_mode = #tpu.pipeline_mode<synchronous>, transform_indices = @transform_6, window_bounds = array<i64: 1, 8>}, {transform_indices = @transform_7, window_bounds = array<i64: 64, 8>}]} {
    %c0 = arith.constant 0 : index
    %c0_0 = arith.constant 0 : index
    %0 = vector.load %arg1[%c0, %c0_0] : memref<64x32xf32, #tpu.memory_space<vmem>>, vector<64x32xf32>
    %1 = arith.truncf %0 : vector<64x32xf32> to vector<64x32xbf16>
    %c0_1 = arith.constant 0 : index
    %c0_2 = arith.constant 0 : index
    %2 = vector.load %arg2[%c0_1, %c0_2] : memref<32x256xbf16, #tpu.memory_space<vmem>>, vector<32x256xbf16>
    %cst = arith.constant dense<0.000000e+00> : vector<64x256xf32>
    %3 = tpu.matmul %1, %2, %cst {dimension_numbers = #tpu.dot_dimension_numbers<[1], [0], [0], [1], [0, 0, 1, 1], [], []>} : vector<64x32xbf16>, vector<32x256xbf16>, vector<64x256xf32> -> vector<64x256xf32>
    %c0_3 = arith.constant 0 : index
    %c0_4 = arith.constant 0 : index
    %4 = vector.load %arg3[%c0_3, %c0_4] : memref<1x256xf32, #tpu.memory_space<vmem>>, vector<1x256xf32>
    %5 = vector.broadcast %4 : vector<1x256xf32> to vector<64x256xf32>
    %6 = arith.addf %3, %5 : vector<64x256xf32>
    %cst_5 = arith.constant 0.000000e+00 : f32
    %7 = vector.broadcast %cst_5 : f32 to vector<64x256xf32>
    %8 = arith.maximumf %6, %7 : vector<64x256xf32>
    %9 = arith.truncf %8 : vector<64x256xf32> to vector<64x256xbf16>
    %c0_6 = arith.constant 0 : index
    %c0_7 = arith.constant 0 : index
    %10 = vector.load %arg4[%c0_6, %c0_7] : memref<256x256xbf16, #tpu.memory_space<vmem>>, vector<256x256xbf16>
    %cst_8 = arith.constant dense<0.000000e+00> : vector<64x256xf32>
    %11 = tpu.matmul %9, %10, %cst_8 {dimension_numbers = #tpu.dot_dimension_numbers<[1], [0], [0], [1], [0, 0, 1, 1], [], []>} : vector<64x256xbf16>, vector<256x256xbf16>, vector<64x256xf32> -> vector<64x256xf32>
    %c0_9 = arith.constant 0 : index
    %c0_10 = arith.constant 0 : index
    %12 = vector.load %arg5[%c0_9, %c0_10] : memref<1x256xf32, #tpu.memory_space<vmem>>, vector<1x256xf32>
    %13 = vector.broadcast %12 : vector<1x256xf32> to vector<64x256xf32>
    %14 = arith.addf %11, %13 : vector<64x256xf32>
    %cst_11 = arith.constant 0.000000e+00 : f32
    %15 = vector.broadcast %cst_11 : f32 to vector<64x256xf32>
    %16 = arith.maximumf %14, %15 : vector<64x256xf32>
    %17 = arith.truncf %16 : vector<64x256xf32> to vector<64x256xbf16>
    %c0_12 = arith.constant 0 : index
    %c0_13 = arith.constant 0 : index
    %18 = vector.load %arg6[%c0_12, %c0_13] : memref<256x8xbf16, #tpu.memory_space<vmem>>, vector<256x8xbf16>
    %cst_14 = arith.constant dense<0.000000e+00> : vector<64x8xf32>
    %19 = tpu.matmul %17, %18, %cst_14 {dimension_numbers = #tpu.dot_dimension_numbers<[1], [0], [0], [1], [0, 0, 1, 1], [], []>} : vector<64x256xbf16>, vector<256x8xbf16>, vector<64x8xf32> -> vector<64x8xf32>
    %c0_15 = arith.constant 0 : index
    %c0_16 = arith.constant 0 : index
    %20 = vector.load %arg7[%c0_15, %c0_16] : memref<1x8xf32, #tpu.memory_space<vmem>>, vector<1x8xf32>
    %21 = vector.broadcast %20 : vector<1x8xf32> to vector<64x8xf32>
    %22 = arith.addf %19, %21 : vector<64x8xf32>
    %23 = math.tanh %22 : vector<64x8xf32>
    %c0_17 = arith.constant 0 : index
    %c0_18 = arith.constant 0 : index
    %24 = vector.load %arg8[%c0_17, %c0_18] : memref<64x8xf32, #tpu.memory_space<vmem>>, vector<64x8xf32>
    tpu.vector_store %arg8[%c0_17, %c0_18], %23 {strides = array<i32>} : memref<64x8xf32, #tpu.memory_space<vmem>>, vector<64x8xf32>,
    return
  }
  func.func @transform_0(%arg0: i32) -> (i32, i32) {
    %c0_i32 = arith.constant 0 : i32
    %c0_i32_0 = arith.constant 0 : i32
    return %arg0, %c0_i32 : i32, i32
  }
  func.func @transform_1(%arg0: i32) -> (i32, i32) {
    %c0_i32 = arith.constant 0 : i32
    %c0_i32_0 = arith.constant 0 : i32
    %c0_i32_1 = arith.constant 0 : i32
    return %c0_i32, %c0_i32_0 : i32, i32
  }
  func.func @transform_2(%arg0: i32) -> (i32, i32) {
    %c0_i32 = arith.constant 0 : i32
    %c0_i32_0 = arith.constant 0 : i32
    %c0_i32_1 = arith.constant 0 : i32
    return %c0_i32, %c0_i32_0 : i32, i32
  }
  func.func @transform_3(%arg0: i32) -> (i32, i32) {
    %c0_i32 = arith.constant 0 : i32
    %c0_i32_0 = arith.constant 0 : i32
    %c0_i32_1 = arith.constant 0 : i32
    return %c0_i32, %c0_i32_0 : i32, i32
  }
  func.func @transform_4(%arg0: i32) -> (i32, i32) {
    %c0_i32 = arith.constant 0 : i32
    %c0_i32_0 = arith.constant 0 : i32
    %c0_i32_1 = arith.constant 0 : i32
    return %c0_i32, %c0_i32_0 : i32, i32
  }
  func.func @transform_5(%arg0: i32) -> (i32, i32) {
    %c0_i32 = arith.constant 0 : i32
    %c0_i32_0 = arith.constant 0 : i32
    %c0_i32_1 = arith.constant 0 : i32
    return %c0_i32, %c0_i32_0 : i32, i32
  }
  func.func @transform_6(%arg0: i32) -> (i32, i32) {
    %c0_i32 = arith.constant 0 : i32
    %c0_i32_0 = arith.constant 0 : i32
    %c0_i32_1 = arith.constant 0 : i32
    return %c0_i32, %c0_i32_0 : i32, i32
  }
  func.func @transform_7(%arg0: i32) -> (i32, i32) {
    %c0_i32 = arith.constant 0 : i32
    %c0_i32_0 = arith.constant 0 : i32
    return %arg0, %c0_i32 : i32, i32
  }
}

</mosaic_0001>

<bundles_post_ra>
// kernel: tpu_custom_call.1
= control target key start
LH: loop header
LB: loop body
LE: loop exit
PB: predicated region body
PF: predicated region fallthrough
CT: control target
= control target key end

     0   :  { %12 = vsyncpa [#allocation3], 0  ;;  %s1448_s24 = smov 0   ;;  %s1821_s0 = inlined_call_operand.vmem [shape: f32[128,32], index: 0, kind: input, shape index: {}]   ;;  %s1822_s1 = inlined_call_operand.vmem [shape: bf16[32,256], index: 1, kind: input, shape index: {}]   ;;  %s1823_s2 = inlined_call_operand.hbm [shape: f32[1,256], index: 2, kind: input, shape index: {}]   ;;  %s1824_s3 = inlined_call_operand.vmem [shape: bf16[256,256], index: 3, kind: input, shape index: {}]   ;;  %s1825_s4 = inlined_call_operand.vmem [shape: f32[1,256], index: 4, kind: input, shape index: {}]   ;;  %s1826_s5 = inlined_call_operand.vmem [shape: bf16[256,8], index: 5, kind: input, shape index: {}]   ;;  %s1827_s6 = inlined_call_operand.vmem [shape: f32[1,8], index: 6, kind: input, shape index: {}]   ;;  %s1828_s7 = inlined_call_operand.vmem [shape: f32[128,8], index: 7, kind: output, shape index: {}]  }
   0x1 LB: > { %s1048_s25 = sadd.s32 4294967295, %s1405_s24   ;;  %p1050_p0 = scmp.ge.s32.totalorder %s1405_s24, 1  ;;  %s1405_s24 = sphi %s1448_s24, %s18_s24  }
   0x2   : > { %p201_p1 = scmp.lt.s32.totalorder %s1405_s24, 3  ;;  %s216_s28 = sshll.u32 %s1823_s2, 4  ;;  %s217_s28 = int_to_ptr.hbm [resolvable:$true] %s216_s28 }
   0x3   : > { %p1337_p3 = scmp.eq.s32.totalorder %s1048_s25, 0  ;;  %s1407_s29 = smov [#allocation2]  }
   0x4   : > { %p202_p2 = pnand %p1050_p0, %p201_p1  ;;  %s218_s30 = sshll.u32 %s1407_s29, 4  ;;  %s219_s30 = int_to_ptr.vmem [resolvable:$true] %s218_s30 }
   0x6   : > { %p1333_p4 = pneg %p202_p2  ;;  %252 = sbr.rel (%p202_p2) target bundleno = 511 (0x1ff), region = 48 }
   0x8   : > { %p1334_p5 = pnand %p1337_p3, %p1333_p4 }
   0xa   : > { %1336 = dma.hbm_to_vmem [thread:$0]  (!%p1334_p5), %s217_s28, 32, %s219_s30, [#allocation3]  }
   0xb   : > { %1400 = dma.done.wait (%p1337_p3), [#allocation3], 32  }
   0xc   : > { %1402 = vsyncadd (%p1337_p3), [#allocation3], 4294967264  ;;  %s1055_s8 = sshll.u32 %s1048_s25, 3  ;;  %v1069_v0 = vld [vmem:[%s1822_s1 + $0x10] sm:$0xf]  ;;  %vm340_vm0 = vcmask 261120  }
   0xd   : > { %p286_p6 = scmp.lt.s32.totalorder %s1055_s8, 15  ;;  %v1280_v1 = vld [vmem:[%s1822_s1 + $0x14] sm:$0xf0]  ;;  %v1279_v2 = vld [vmem:[%s1822_s1 + $0x14] sm:$0xf]  ;;  %vm971_vm1 = vcmask 64512  }
   0xe   : > { %v1070_v3 = vor.u32 %v1280_v1, %v1069_v0  ;;  %v1071_v4 = vld [vmem:[%s1822_s1 + $0x18] sm:$0xf0]  ;;  %v1061_v5 = vld [vmem:[%s1822_s1] sm:$0xf]  ;;  %v1278_v6 = vld [vmem:[%s1822_s1 + $0x4] sm:$0xf0] }
   0xf   : > { %s1830_s8 = smov (!%p286_p6, %s1055_s8), 15  ;;  %v1074_v7 = vor.u32 %v1279_v2, %v1071_v4  ;;  %v1277_v8 = vld [vmem:[%s1822_s1 + $0x4] sm:$0xf]  ;;  %v1063_v9 = vld [vmem:[%s1822_s1 + $0x8] sm:$0xf0]  ;;  %v1062_v10 = vor.u32 %v1278_v6, %v1061_v5 }
  0x10   : > { %s1056_s9 = sshll.u32 %s1830_s8, 3  ;;  %359 = vmatpush.bf16.msra.mxu0 %v1070_v3  ;;  %v1066_v13 = vor.u32 %v1277_v8, %v1063_v9  ;;  %v1295_v18 = vld [vmem:[%s1824_s3 + $0x74] sm:$0xf]  ;;  %v1143_v19 = vld [vmem:[%s1824_s3 + $0x78] sm:$0xf0] }
  0x11   : > { %s1476_s18 = scalar_lea.vmem %s1821_s0, %s1056_s9  ;;  %388 = vmatpush.bf16.msra.mxu1 %v1074_v7  ;;  %v1311_v20 = vld [vmem:[%s1824_s3 + $0xf4] sm:$0xf]  ;;  %v1146_v21 = vor.u32 %v1295_v18, %v1143_v19  ;;  %v1207_v22 = vld [vmem:[%s1824_s3 + $0xf8] sm:$0xf0]  ;;  %v1293_v23 = vld [vmem:[%s1824_s3 + $0x64] sm:$0xf]  ;;  %s1800_s19 = scalar_lea.vmem %s1828_s7, %s1056_s9 }
  0x12   : > { %v298_v11 = vld [vmem:[%s1476_s18] sm:$0xff]  ;;  %v299_v12 = vld [vmem:[%s1476_s18 + $0x8] sm:$0xff]  ;;  %v300_v15 = vld [vmem:[%s1476_s18 + $0x10] sm:$0xff]  ;;  %v1210_v25 = vor.u32 %v1311_v20, %v1207_v22 }
  0x13   : > { %v306_v14 = vpack.c.bf16 %v299_v12, %v298_v11  ;;  %v301_v16 = vld [vmem:[%s1476_s18 + $0x18] sm:$0xff]  ;;  %v1135_v24 = vld [vmem:[%s1824_s3 + $0x68] sm:$0xf0]  ;;  %v1309_v26 = vld [vmem:[%s1824_s3 + $0xe4] sm:$0xf] }
  0x14   : > { %360 = vmatpush.bf16.msra.mxu0 %v1062_v10  ;;  %v307_v17 = vpack.c.bf16 %v301_v16, %v300_v15  ;;  %v1199_v27 = vld [vmem:[%s1824_s3 + $0xe8] sm:$0xf0]  ;;  %v1138_v28 = vor.u32 %v1293_v23, %v1135_v24  ;;  %v1291_v29 = vld [vmem:[%s1824_s3 + $0x54] sm:$0xf]  ;;  %v1127_v30 = vld [vmem:[%s1824_s3 + $0x58] sm:$0xf0] }
  0x15   : > { %389 = vmatpush.bf16.msra.mxu1 %v1066_v13  ;;  %v1202_v31 = vor.u32 %v1309_v26, %v1199_v27  ;;  %v1307_v32 = vld [vmem:[%s1824_s3 + $0xd4] sm:$0xf]  ;;  %v1191_v33 = vld [vmem:[%s1824_s3 + $0xd8] sm:$0xf0]  ;;  %v1141_v34 = vld [vmem:[%s1824_s3 + $0x70] sm:$0xf]  ;;  %v1130_v41 = vor.u32 %v1291_v29, %v1127_v30 }
  0x16   : > { %v1296_v35 = vld [vmem:[%s1824_s3 + $0x74] sm:$0xf0]  ;;  %v1205_v36 = vld [vmem:[%s1824_s3 + $0xf0] sm:$0xf]  ;;  %v1133_v40 = vld [vmem:[%s1824_s3 + $0x60] sm:$0xf]  ;;  %v1194_v47 = vor.u32 %v1307_v32, %v1191_v33 }
  0x17   : > { %1075 = vmatmul.msk.bf16.vlgmr.msra.gmra.mxu0 %vm340_vm0, %v306_v14  ;;  %v1312_v37 = vld [vmem:[%s1824_s3 + $0xf4] sm:$0xf0]  ;;  %v1142_v38 = vor.u32 %v1296_v35, %v1141_v34  ;;  %v1294_v42 = vld [vmem:[%s1824_s3 + $0x64] sm:$0xf0]  ;;  %v1197_v43 = vld [vmem:[%s1824_s3 + $0xe0] sm:$0xf] }
  0x18   : > { %1079 = vmatmul.msk.bf16.vlgmr.msra.gmra.mxu1 %vm340_vm0, %v306_v14  ;;  %691 = vmatpush.bf16.msrb.mxu0 %v1146_v21  ;;  %v1206_v39 = vor.u32 %v1312_v37, %v1205_v36  ;;  %v1310_v44 = vld [vmem:[%s1824_s3 + $0xe4] sm:$0xf0]  ;;  %v302_v45 = vld [vmem:[%s1476_s18 + $0x20] sm:$0xff]  ;;  %v1134_v48 = vor.u32 %v1294_v42, %v1133_v40  ;;  %v1119_v50 = vld [vmem:[%s1824_s3 + $0x48] sm:$0xf0] }
  0x19   : > { %720 = vmatpush.bf16.msrb.mxu1 %v1210_v25  ;;  %v303_v46 = vld [vmem:[%s1476_s18 + $0x28] sm:$0xff]  ;;  %633 = vmatpush.bf16.msra.mxu2 %v1142_v38  ;;  %v1289_v49 = vld [vmem:[%s1824_s3 + $0x44] sm:$0xf]  ;;  %v1198_v52 = vor.u32 %v1310_v44, %v1197_v43  ;;  %v1125_v54 = vld [vmem:[%s1824_s3 + $0x50] sm:$0xf] }
  0x1a   : > { %662 = vmatpush.bf16.msra.mxu3 %v1206_v39  ;;  %v1305_v51 = vld [vmem:[%s1824_s3 + $0xc4] sm:$0xf]  ;;  %v1183_v53 = vld [vmem:[%s1824_s3 + $0xc8] sm:$0xf0]  ;;  %v1292_v55 = vld [vmem:[%s1824_s3 + $0x54] sm:$0xf0]  ;;  %v308_v56 = vpack.c.bf16 %v303_v46, %v302_v45  ;;  %v1122_v59 = vor.u32 %v1289_v49, %v1119_v50 }
  0x1b   : > { %v1189_v57 = vld [vmem:[%s1824_s3 + $0xd0] sm:$0xf]  ;;  %v1308_v58 = vld [vmem:[%s1824_s3 + $0xd4] sm:$0xf0]  ;;  %v1186_v60 = vor.u32 %v1305_v51, %v1183_v53  ;;  %v1287_v61 = vld [vmem:[%s1824_s3 + $0x34] sm:$0xf]  ;;  %v1126_v63 = vor.u32 %v1292_v55, %v1125_v54 }
  0x1c   : > { %692 = vmatpush.bf16.msrb.mxu0 %v1138_v28  ;;  %v1111_v62 = vld [vmem:[%s1824_s3 + $0x38] sm:$0xf0]  ;;  %v1303_v0 = vld [vmem:[%s1824_s3 + $0xb4] sm:$0xf]  ;;  %v1190_v1 = vor.u32 %v1308_v58, %v1189_v57  ;;  %v1117_v3 = vld [vmem:[%s1824_s3 + $0x40] sm:$0xf] }
  0x1d   : > { %721 = vmatpush.bf16.msrb.mxu1 %v1202_v31  ;;  %634 = vmatpush.bf16.msra.mxu2 %v1134_v48  ;;  %v1175_v2 = vld [vmem:[%s1824_s3 + $0xb8] sm:$0xf0]  ;;  %v1290_v4 = vld [vmem:[%s1824_s3 + $0x44] sm:$0xf0]  ;;  %v1181_v5 = vld [vmem:[%s1824_s3 + $0xc0] sm:$0xf]  ;;  %v1114_v7 = vor.u32 %v1287_v61, %v1111_v62 }
  0x1e   : > { %663 = vmatpush.bf16.msra.mxu3 %v1198_v52  ;;  %v1306_v6 = vld [vmem:[%s1824_s3 + $0xc4] sm:$0xf0]  ;;  %v1178_v8 = vor.u32 %v1303_v0, %v1175_v2  ;;  %v1118_v9 = vor.u32 %v1290_v4, %v1117_v3  ;;  %v1285_v10 = vld [vmem:[%s1824_s3 + $0x24] sm:$0xf]  ;;  %v1103_v11 = vld [vmem:[%s1824_s3 + $0x28] sm:$0xf0] }
  0x1f   : > { %v1182_v12 = vor.u32 %v1306_v6, %v1181_v5  ;;  %v1106_v13 = vor.u32 %v1285_v10, %v1103_v11  ;;  %v304_v14 = vld [vmem:[%s1476_s18 + $0x30] sm:$0xff]  ;;  %v305_v15 = vld [vmem:[%s1476_s18 + $0x38] sm:$0xff]  ;;  %v1301_v23 = vld [vmem:[%s1824_s3 + $0xa4] sm:$0xf] }
  0x20   : > { %693 = vmatpush.bf16.msrb.mxu0 %v1130_v41  ;;  %v309_v16 = vpack.c.bf16 %v305_v15, %v304_v14  ;;  %v1288_v18 = vld [vmem:[%s1824_s3 + $0x34] sm:$0xf0]  ;;  %v1173_v19 = vld [vmem:[%s1824_s3 + $0xb0] sm:$0xf]  ;;  %v1167_v24 = vld [vmem:[%s1824_s3 + $0xa8] sm:$0xf0] }
  0x21   : > { %722 = vmatpush.bf16.msrb.mxu1 %v1194_v47  ;;  %635 = vmatpush.bf16.msra.mxu2 %v1126_v63  ;;  %v1304_v21 = vld [vmem:[%s1824_s3 + $0xb4] sm:$0xf0]  ;;  %v1170_v25 = vor.u32 %v1301_v23, %v1167_v24  ;;  %v1101_v26 = vld [vmem:[%s1824_s3 + $0x20] sm:$0xf]  ;;  %v1286_v27 = vld [vmem:[%s1824_s3 + $0x24] sm:$0xf0] }
  0x22   : > { %664 = vmatpush.bf16.msra.mxu3 %v1190_v1  ;;  %v1174_v22 = vor.u32 %v1304_v21, %v1173_v19  ;;  %v1165_v28 = vld [vmem:[%s1824_s3 + $0xa0] sm:$0xf]  ;;  %v1102_v29 = vor.u32 %v1286_v27, %v1101_v26  ;;  %v1302_v30 = vld [vmem:[%s1824_s3 + $0xa4] sm:$0xf0]  ;;  %v1283_v31 = vld [vmem:[%s1824_s3 + $0x14] sm:$0xf] }
  0x23   : > { %v1095_v32 = vld [vmem:[%s1824_s3 + $0x18] sm:$0xf0]  ;;  %v1166_v33 = vor.u32 %v1302_v30, %v1165_v28  ;;  %v1093_v35 = vld [vmem:[%s1824_s3 + $0x10] sm:$0xf]  ;;  %v1284_v36 = vld [vmem:[%s1824_s3 + $0x14] sm:$0xf0] }
  0x24   : > { %694 = vmatpush.bf16.msrb.mxu0 %v1122_v59  ;;  %v1098_v34 = vor.u32 %v1283_v31, %v1095_v32  ;;  %v1157_v37 = vld [vmem:[%s1824_s3 + $0x90] sm:$0xf]  ;;  %v1094_v38 = vor.u32 %v1284_v36, %v1093_v35  ;;  %v1300_v39 = vld [vmem:[%s1824_s3 + $0x94] sm:$0xf0]  ;;  %v1299_v40 = vld [vmem:[%s1824_s3 + $0x94] sm:$0xf] }
  0x25   : > { %723 = vmatpush.bf16.msrb.mxu1 %v1186_v60  ;;  %636 = vmatpush.bf16.msra.mxu2 %v1118_v9  ;;  %v1159_v41 = vld [vmem:[%s1824_s3 + $0x98] sm:$0xf0]  ;;  %v1158_v42 = vor.u32 %v1300_v39, %v1157_v37  ;;  %v1085_v44 = vld [vmem:[%s1824_s3] sm:$0xf]  ;;  %v1282_v45 = vld [vmem:[%s1824_s3 + $0x4] sm:$0xf0] }
  0x26   : > { %665 = vmatpush.bf16.msra.mxu3 %v1182_v12  ;;  %v1162_v43 = vor.u32 %v1299_v40, %v1159_v41  ;;  %v1149_v46 = vld [vmem:[%s1824_s3 + $0x80] sm:$0xf]  ;;  %v1086_v47 = vor.u32 %v1282_v45, %v1085_v44  ;;  %v1298_v48 = vld [vmem:[%s1824_s3 + $0x84] sm:$0xf0]  ;;  %v1281_v49 = vld [vmem:[%s1824_s3 + $0x4] sm:$0xf] }
  0x27   : > { %1076 = vmatmul.msk.bf16.gmra.mxu0 %vm340_vm0, %v307_v17  ;;  %v1087_v50 = vld [vmem:[%s1824_s3 + $0x8] sm:$0xf0]  ;;  %v1150_v51 = vor.u32 %v1298_v48, %v1149_v46  ;;  %v1297_v53 = vld [vmem:[%s1824_s3 + $0x84] sm:$0xf]  ;;  %v1320_v24 = vld [vmem:[%s1826_s5 + $0x38] sm:$0xff] }
  0x28   : > { %1080 = vmatmul.msk.bf16.gmra.mxu1 %vm340_vm0, %v307_v17  ;;  %695 = vmatpush.bf16.msrb.mxu0 %v1114_v7  ;;  %v1109_v17 = vld [vmem:[%s1824_s3 + $0x30] sm:$0xf]  ;;  %v1090_v52 = vor.u32 %v1281_v49, %v1087_v50  ;;  %v1151_v54 = vld [vmem:[%s1824_s3 + $0x88] sm:$0xf0]  ;;  %v1317_v37 = vld [vmem:[%s1826_s5 + $0x20] sm:$0xff] }
  0x29   : > { %724 = vmatpush.bf16.msrb.mxu1 %v1178_v8  ;;  %v1110_v20 = vor.u32 %v1288_v18, %v1109_v17  ;;  %v1154_v55 = vor.u32 %v1297_v53, %v1151_v54  ;;  %v1319_v27 = vld [vmem:[%s1826_s5 + $0x30] sm:$0xff]  ;;  %v1326_v30 = vld [vmem:[%s1826_s5 + $0x68] sm:$0xff]  ;;  %v1316_v45 = vld [vmem:[%s1826_s5 + $0x18] sm:$0xff] }
  0x2a   : > { %666 = vmatpush.bf16.msra.mxu3 %v1174_v22  ;;  %v1327_v28 = vld [vmem:[%s1826_s5 + $0x70] sm:$0xff]  ;;  %v1324_v46 = vld [vmem:[%s1826_s5 + $0x58] sm:$0xff] }
  0x2b   : > { %637 = vmatpush.bf16.msra.mxu2 %v1110_v20  ;;  %v1315_v49 = vld [vmem:[%s1826_s5 + $0x10] sm:$0xff] }
  0x2c   : > { %696 = vmatpush.bf16.msrb.mxu0 %v1106_v13 }
  0x2d   : > { %725 = vmatpush.bf16.msrb.mxu1 %v1170_v25  ;;  %v1328_v25 = vld [vmem:[%s1826_s5 + $0x78] sm:$0xff] }
  0x2e   : > { %667 = vmatpush.bf16.msra.mxu3 %v1166_v33 }
  0x2f   : > { %638 = vmatpush.bf16.msra.mxu2 %v1102_v29  ;;  %v1318_v29 = vld [vmem:[%s1826_s5 + $0x28] sm:$0xff] }
  0x30   : > { %697 = vmatpush.bf16.msrb.mxu0 %v1098_v34 }
  0x31   : > { %726 = vmatpush.bf16.msrb.mxu1 %v1162_v43 }
  0x32   : > { %668 = vmatpush.bf16.msra.mxu3 %v1158_v42 }
  0x33   : > { %639 = vmatpush.bf16.msra.mxu2 %v1094_v38  ;;  %v1325_v38 = vld [vmem:[%s1826_s5 + $0x60] sm:$0xff] }
  0x34   : > { %698 = vmatpush.bf16.msrb.mxu0 %v1090_v52 }
  0x35   : > { %727 = vmatpush.bf16.msrb.mxu1 %v1154_v55 }
  0x36   : > { %669 = vmatpush.bf16.msra.mxu3 %v1150_v51 }
  0x37   : > { %1077 = vmatmul.msk.bf16.gmra.mxu0 %vm340_vm0, %v308_v56  ;;  %640 = vmatpush.bf16.msra.mxu2 %v1086_v47 }
  0x38   : > { %1081 = vmatmul.msk.bf16.gmra.mxu1 %vm340_vm0, %v308_v56  ;;  %v314_v56 = vld [vmem:[#allocation2] sm:$0x3] }
  0x39   : > { %v1701_v59 = vperm.slane %v314_v56, 0  ;;  %v1703_v60 = vperm.slane %v314_v56, 1 }
  0x3a   : > { %934 = vmatpush.bf16.msrb.mxu3 %v1328_v25 }
  0x3b   : > { %905 = vmatpush.bf16.msrb.mxu2 %v1320_v24 }
  0x3e   : > { %935 = vmatpush.bf16.msrb.mxu3 %v1327_v28 }
  0x3f   : > { %906 = vmatpush.bf16.msrb.mxu2 %v1319_v27 }
  0x42   : > { %936 = vmatpush.bf16.msrb.mxu3 %v1326_v30 }
  0x43   : > { %907 = vmatpush.bf16.msrb.mxu2 %v1318_v29 }
  0x46   : > { %937 = vmatpush.bf16.msrb.mxu3 %v1325_v38 }
  0x47   : > { %1078 = vmatmul.msk.bf16.gmra.mxu0 %vm340_vm0, %v309_v16  ;;  %908 = vmatpush.bf16.msrb.mxu2 %v1317_v37 }
  0x48   : > { %1082 = vmatmul.msk.bf16.gmra.mxu1 %vm340_vm0, %v309_v16 }
  0x4a   : > { %938 = vmatpush.bf16.msrb.mxu3 %v1324_v46 }
  0x4b   : > { %909 = vmatpush.bf16.msrb.mxu2 %v1316_v45 }
  0x4f   : > { %910 = vmatpush.bf16.msrb.mxu2 %v1315_v49 }
  0x94   : > { %v362_v57 = vpop.f32.mrf.mxu0 }
  0x95   : > { %v391_v58 = vpop.f32.mrf.mxu1  ;;  %v363_v61 = vadd.f32 %v362_v57, %v1701_v59 }
  0x96   : > { %v392_v62 = vadd.f32 %v391_v58, %v1703_v60 }
  0x97   : > { %v411_v3 = vmax.f32 %v363_v61, 0.0 }
  0x98   : > { %v412_v5 = vmax.f32 %v392_v62, 0.0 }
  0x9c   : > { %v364_v63 = vpop.f32.mrf.mxu0 }
  0x9d   : > { %v365_v0 = vadd.f32 %v364_v63, %v1701_v59  ;;  %v393_v1 = vpop.f32.mrf.mxu1 }
  0x9e   : > { %v394_v2 = vadd.f32 %v393_v1, %v1703_v60  ;;  %v1321_v1 = vld [vmem:[%s1826_s5 + $0x40] sm:$0xff] }
  0x9f   : > { %v413_v4 = vmax.f32 %v365_v0, 0.0  ;;  %v1323_v0 = vld [vmem:[%s1826_s5 + $0x50] sm:$0xff] }
  0xa0   : > { %v414_v6 = vmax.f32 %v394_v2, 0.0  ;;  %939 = vmatpush.bf16.msrb.mxu3 %v1323_v0  ;;  %v1313_v2 = vld [vmem:[%s1826_s5] sm:$0xff] }
  0xa1   : > { %v427_v7 = vpack.c.bf16 %v413_v4, %v411_v3  ;;  %v467_v3 = vld [vmem:[%s1825_s4] sm:$0x3] }
  0xa2   : > { %v428_v8 = vpack.c.bf16 %v414_v6, %v412_v5  ;;  %v1772_v5 = vperm.slane %v467_v3, 1 }
  0xa3   : > { %641 = vmatmul.bf16.vlgmr.msra.gmra.mxu2 %v427_v7  ;;  %699 = vmatmul.bf16.vlgmr.msrb.gmra.mxu0 %v427_v7 }
  0xa4   : > { %670 = vmatmul.bf16.vlgmr.msra.gmra.mxu3 %v428_v8  ;;  %728 = vmatmul.bf16.vlgmr.msrb.gmra.mxu1 %v428_v8  ;;  %v367_v9 = vpop.f32.mrf.mxu0 }
  0xa5   : > { %v396_v10 = vpop.f32.mrf.mxu1  ;;  %v368_v11 = vadd.f32 %v367_v9, %v1701_v59  ;;  %v1775_v9 = vperm.slane %v467_v3, 0 }
  0xa6   : > { %v397_v12 = vadd.f32 %v396_v10, %v1703_v60 }
  0xa7   : > { %v415_v17 = vmax.f32 %v368_v11, 0.0 }
  0xa8   : > { %v416_v19 = vmax.f32 %v397_v12, 0.0 }
  0xac   : > { %v369_v13 = vpop.f32.mrf.mxu0 }
  0xad   : > { %v370_v14 = vadd.f32 %v369_v13, %v1701_v59  ;;  %v398_v15 = vpop.f32.mrf.mxu1 }
  0xae   : > { %v399_v16 = vadd.f32 %v398_v15, %v1703_v60 }
  0xaf   : > { %v417_v18 = vmax.f32 %v370_v14, 0.0 }
  0xb0   : > { %v418_v20 = vmax.f32 %v399_v16, 0.0 }
  0xb1   : > { %v429_v21 = vpack.c.bf16 %v417_v18, %v415_v17 }
  0xb2   : > { %v430_v22 = vpack.c.bf16 %v418_v20, %v416_v19 }
  0xb3   : > { %646 = vmatmul.bf16.gmra.mxu2 %v429_v21  ;;  %704 = vmatmul.bf16.gmra.mxu0 %v429_v21 }
  0xb4   : > { %675 = vmatmul.bf16.gmra.mxu3 %v430_v22  ;;  %733 = vmatmul.bf16.gmra.mxu1 %v430_v22  ;;  %v372_v23 = vpop.f32.mrf.mxu0 }
  0xb5   : > { %v401_v26 = vpop.f32.mrf.mxu1  ;;  %v373_v31 = vadd.f32 %v372_v23, %v1701_v59 }
  0xb6   : > { %v402_v32 = vadd.f32 %v401_v26, %v1703_v60 }
  0xb7   : > { %v419_v39 = vmax.f32 %v373_v31, 0.0 }
  0xb8   : > { %v420_v41 = vmax.f32 %v402_v32, 0.0 }
  0xbc   : > { %v374_v33 = vpop.f32.mrf.mxu0 }
  0xbd   : > { %v375_v34 = vadd.f32 %v374_v33, %v1701_v59  ;;  %v403_v35 = vpop.f32.mrf.mxu1 }
  0xbe   : > { %v404_v36 = vadd.f32 %v403_v35, %v1703_v60 }
  0xbf   : > { %v421_v40 = vmax.f32 %v375_v34, 0.0 }
  0xc0   : > { %v422_v42 = vmax.f32 %v404_v36, 0.0 }
  0xc1   : > { %v431_v43 = vpack.c.bf16 %v421_v40, %v419_v39 }
  0xc2   : > { %v432_v44 = vpack.c.bf16 %v422_v42, %v420_v41 }
  0xc3   : > { %651 = vmatmul.bf16.gmra.mxu2 %v431_v43  ;;  %709 = vmatmul.bf16.gmra.mxu0 %v431_v43 }
  0xc4   : > { %680 = vmatmul.bf16.gmra.mxu3 %v432_v44  ;;  %738 = vmatmul.bf16.gmra.mxu1 %v432_v44  ;;  %v377_v47 = vpop.f32.mrf.mxu0 }
  0xc5   : > { %v406_v48 = vpop.f32.mrf.mxu1  ;;  %v378_v50 = vadd.f32 %v377_v47, %v1701_v59 }
  0xc6   : > { %v407_v51 = vadd.f32 %v406_v48, %v1703_v60 }
  0xc7   : > { %v423_v56 = vmax.f32 %v378_v50, 0.0 }
  0xc8   : > { %v424_v58 = vmax.f32 %v407_v51, 0.0 }
  0xcc   : > { %v379_v52 = vpop.f32.mrf.mxu0 }
  0xcd   : > { %v380_v53 = vadd.f32 %v379_v52, %v1701_v59  ;;  %v408_v54 = vpop.f32.mrf.mxu1  ;;  %v1322_v59 = vld [vmem:[%s1826_s5 + $0x48] sm:$0xff] }
  0xce   : > { %v409_v55 = vadd.f32 %v408_v54, %v1703_v60  ;;  %v1314_v60 = vld [vmem:[%s1826_s5 + $0x8] sm:$0xff]  ;;  %940 = vmatpush.bf16.msrb.mxu3 %v1322_v59 }
  0xcf   : > { %v425_v57 = vmax.f32 %v380_v53, 0.0  ;;  %911 = vmatpush.bf16.msrb.mxu2 %v1314_v60 }
  0xd0   : > { %v426_v61 = vmax.f32 %v409_v55, 0.0 }
  0xd1   : > { %v433_v62 = vpack.c.bf16 %v425_v57, %v423_v56 }
  0xd2   : > { %v434_v63 = vpack.c.bf16 %v426_v61, %v424_v58  ;;  %941 = vmatpush.bf16.msrb.mxu3 %v1321_v1 }
  0xd3   : > { %656 = vmatmul.bf16.gmra.mxu2 %v433_v62  ;;  %714 = vmatmul.bf16.gmra.mxu0 %v433_v62 }
  0xd4   : > { %685 = vmatmul.bf16.gmra.mxu3 %v434_v63  ;;  %743 = vmatmul.bf16.gmra.mxu1 %v434_v63 }
  0xd5   : > { %912 = vmatpush.bf16.msrb.mxu2 %v1313_v2 }
 0x120   : > { %v700_v4 = vpop.f32.mrf.mxu0 }
 0x121   : > { %v729_v6 = vpop.f32.mrf.mxu1  ;;  %v701_v7 = vadd.f32 %v700_v4, %v1772_v5 }
 0x123   : > { %v730_v12 = vadd.f32 %v729_v6, %v701_v7 }
 0x125   : > { %v750_v17 = vmax.f32 %v730_v12, 0.0 }
 0x126   : > { %v642_v8 = vpop.f32.mrf.mxu2 }
 0x127   : > { %v671_v10 = vpop.f32.mrf.mxu3  ;;  %v643_v15 = vadd.f32 %v642_v8, %v1775_v9 }
 0x128   : > { %v702_v11 = vpop.f32.mrf.mxu0 }
 0x129   : > { %v703_v13 = vadd.f32 %v702_v11, %v1772_v5  ;;  %v731_v14 = vpop.f32.mrf.mxu1  ;;  %v672_v20 = vadd.f32 %v671_v10, %v643_v15 }
 0x12b   : > { %v732_v16 = vadd.f32 %v731_v14, %v703_v13  ;;  %v749_v27 = vmax.f32 %v672_v20, 0.0 }
 0x12d   : > { %v752_v18 = vmax.f32 %v732_v16, 0.0 }
 0x12e   : > { %v644_v19 = vpop.f32.mrf.mxu2 }
 0x12f   : > { %v766_v21 = vpack.c.bf16 %v752_v18, %v750_v17  ;;  %v645_v22 = vadd.f32 %v644_v19, %v1775_v9  ;;  %v673_v23 = vpop.f32.mrf.mxu3 }
 0x130   : > { %v705_v24 = vpop.f32.mrf.mxu0 }
 0x131   : > { %v674_v25 = vadd.f32 %v673_v23, %v645_v22  ;;  %v734_v26 = vpop.f32.mrf.mxu1  ;;  %942 = vmatmul.bf16.vlgmr.msrb.gmra.mxu3 %v766_v21  ;;  %v706_v30 = vadd.f32 %v705_v24, %v1772_v5 }
 0x133   : > { %v751_v28 = vmax.f32 %v674_v25, 0.0  ;;  %v735_v34 = vadd.f32 %v734_v26, %v706_v30 }
 0x135   : > { %v765_v29 = vpack.c.bf16 %v751_v28, %v749_v27  ;;  %v754_v39 = vmax.f32 %v735_v34, 0.0 }
 0x136   : > { %v647_v31 = vpop.f32.mrf.mxu2 }
 0x137   : > { %v676_v32 = vpop.f32.mrf.mxu3  ;;  %913 = vmatmul.bf16.vlgmr.msrb.gmra.mxu2 %v765_v29  ;;  %v648_v37 = vadd.f32 %v647_v31, %v1775_v9 }
 0x138   : > { %v707_v33 = vpop.f32.mrf.mxu0 }
 0x139   : > { %v708_v35 = vadd.f32 %v707_v33, %v1772_v5  ;;  %v736_v36 = vpop.f32.mrf.mxu1  ;;  %v677_v42 = vadd.f32 %v676_v32, %v648_v37  ;;  %v1348_v32 = vld [vmem:[%s1827_s6] ss:$0 sm:$0xff] }
 0x13b   : > { %v737_v38 = vadd.f32 %v736_v36, %v708_v35  ;;  %v753_v49 = vmax.f32 %v677_v42, 0.0 }
 0x13d   : > { %v756_v40 = vmax.f32 %v737_v38, 0.0 }
 0x13e   : > { %v649_v41 = vpop.f32.mrf.mxu2 }
 0x13f   : > { %v650_v43 = vadd.f32 %v649_v41, %v1775_v9  ;;  %v678_v44 = vpop.f32.mrf.mxu3  ;;  %v768_v45 = vpack.c.bf16 %v756_v40, %v754_v39 }
 0x140   : > { %v710_v46 = vpop.f32.mrf.mxu0 }
 0x141   : > { %v679_v47 = vadd.f32 %v678_v44, %v650_v43  ;;  %v739_v48 = vpop.f32.mrf.mxu1  ;;  %947 = vmatmul.bf16.gmra.mxu3 %v768_v45  ;;  %v711_v51 = vadd.f32 %v710_v46, %v1772_v5 }
 0x143   : > { %v755_v50 = vmax.f32 %v679_v47, 0.0  ;;  %v740_v56 = vadd.f32 %v739_v48, %v711_v51 }
 0x145   : > { %v767_v52 = vpack.c.bf16 %v755_v50, %v753_v49  ;;  %v758_v63 = vmax.f32 %v740_v56, 0.0 }
 0x146   : > { %v652_v53 = vpop.f32.mrf.mxu2 }
 0x147   : > { %v681_v54 = vpop.f32.mrf.mxu3  ;;  %918 = vmatmul.bf16.gmra.mxu2 %v767_v52  ;;  %v653_v61 = vadd.f32 %v652_v53, %v1775_v9 }
 0x148   : > { %v712_v55 = vpop.f32.mrf.mxu0 }
 0x149   : > { %v713_v57 = vadd.f32 %v712_v55, %v1772_v5  ;;  %v741_v58 = vpop.f32.mrf.mxu1  ;;  %v682_v60 = vadd.f32 %v681_v54, %v653_v61 }
 0x14b   : > { %v742_v62 = vadd.f32 %v741_v58, %v713_v57  ;;  %v757_v8 = vmax.f32 %v682_v60, 0.0 }
 0x14d   : > { %v760_v0 = vmax.f32 %v742_v62, 0.0 }
 0x14e   : > { %v654_v59 = vpop.f32.mrf.mxu2 }
 0x14f   : > { %v655_v1 = vadd.f32 %v654_v59, %v1775_v9  ;;  %v683_v2 = vpop.f32.mrf.mxu3  ;;  %v770_v3 = vpack.c.bf16 %v760_v0, %v758_v63 }
 0x150   : > { %v715_v4 = vpop.f32.mrf.mxu0 }
 0x151   : > { %v684_v6 = vadd.f32 %v683_v2, %v655_v1  ;;  %v744_v7 = vpop.f32.mrf.mxu1  ;;  %952 = vmatmul.bf16.gmra.mxu3 %v770_v3  ;;  %v716_v11 = vadd.f32 %v715_v4, %v1772_v5 }
 0x153   : > { %v759_v10 = vmax.f32 %v684_v6, 0.0  ;;  %v745_v16 = vadd.f32 %v744_v7, %v716_v11 }
 0x155   : > { %v769_v12 = vpack.c.bf16 %v759_v10, %v757_v8  ;;  %v762_v21 = vmax.f32 %v745_v16, 0.0 }
 0x156   : > { %v657_v13 = vpop.f32.mrf.mxu2 }
 0x157   : > { %v686_v14 = vpop.f32.mrf.mxu3  ;;  %923 = vmatmul.bf16.gmra.mxu2 %v769_v12  ;;  %v658_v19 = vadd.f32 %v657_v13, %v1775_v9 }
 0x158   : > { %v717_v15 = vpop.f32.mrf.mxu0 }
 0x159   : > { %v718_v17 = vadd.f32 %v717_v15, %v1772_v5  ;;  %v746_v18 = vpop.f32.mrf.mxu1  ;;  %v687_v24 = vadd.f32 %v686_v14, %v658_v19 }
 0x15b   : > { %v747_v20 = vadd.f32 %v746_v18, %v718_v17  ;;  %v761_v29 = vmax.f32 %v687_v24, 0.0 }
 0x15d   : > { %v764_v22 = vmax.f32 %v747_v20, 0.0 }
 0x15e   : > { %v659_v23 = vpop.f32.mrf.mxu2 }
 0x15f   : > { %v660_v25 = vadd.f32 %v659_v23, %v1775_v9  ;;  %v772_v26 = vpack.c.bf16 %v764_v22, %v762_v21  ;;  %v688_v27 = vpop.f32.mrf.mxu3 }
 0x161   : > { %v689_v28 = vadd.f32 %v688_v27, %v660_v25  ;;  %957 = vmatmul.bf16.gmra.mxu3 %v772_v26 }
 0x163   : > { %v763_v30 = vmax.f32 %v689_v28, 0.0 }
 0x165   : > { %v771_v31 = vpack.c.bf16 %v763_v30, %v761_v29 }
 0x167   : > { %928 = vmatmul.bf16.gmra.mxu2 %v771_v31 }
 0x1b4   : > { %v943_v5 = vpop.f32.mrf.mxu3 }
 0x1ba   : > { %v914_v33 = vpop.f32.mrf.mxu2 }
 0x1bb   : > { %v915_v34 = vadd.f32 %v1348_v32, %v914_v33 }
 0x1bc   : > { %v945_v35 = vpop.f32.mrf.mxu3 }
 0x1bd   : > { %v944_v36 = vadd.f32 %v943_v5, %v915_v34 }
 0x1bf   : > { %1349 = vtanh.f32 %v944_v36 }
 0x1c2   : > { %v916_v9 = vpop.f32.mrf.mxu2 }
 0x1c3   : > { %v917_v37 = vadd.f32 %v1348_v32, %v916_v9 }
 0x1c4   : > { %v948_v38 = vpop.f32.mrf.mxu3 }
 0x1c5   : > { %v1350_v39 = vpop.eup %1349  ;;  %v946_v40 = vadd.f32 %v945_v35, %v917_v37 }
 0x1c6   : > { %972 = vst.msk [vmem:[%s1800_s19] sm:$0xff] %vm971_vm1, %v1350_v39 }
 0x1c7   : > { %1351 = vtanh.f32 %v946_v40 }
 0x1ca   : > { %v919_v41 = vpop.f32.mrf.mxu2 }
 0x1cb   : > { %v920_v42 = vadd.f32 %v1348_v32, %v919_v41 }
 0x1cc   : > { %v950_v43 = vpop.f32.mrf.mxu3 }
 0x1cd   : > { %v1352_v44 = vpop.eup %1351  ;;  %v949_v45 = vadd.f32 %v948_v38, %v920_v42 }
 0x1ce   : > { %973 = vst.msk [vmem:[%s1800_s19 + $0x8] sm:$0xff] %vm971_vm1, %v1352_v44 }
 0x1cf   : > { %1353 = vtanh.f32 %v949_v45 }
 0x1d2   : > { %v921_v46 = vpop.f32.mrf.mxu2 }
 0x1d3   : > { %v922_v47 = vadd.f32 %v1348_v32, %v921_v46 }
 0x1d4   : > { %v953_v50 = vpop.f32.mrf.mxu3 }
 0x1d5   : > { %v1354_v48 = vpop.eup %1353  ;;  %v951_v49 = vadd.f32 %v950_v43, %v922_v47 }
 0x1d6   : > { %974 = vst.msk [vmem:[%s1800_s19 + $0x10] sm:$0xff] %vm971_vm1, %v1354_v48 }
 0x1d7   : > { %1355 = vtanh.f32 %v951_v49 }
 0x1da   : > { %v924_v51 = vpop.f32.mrf.mxu2 }
 0x1db   : > { %v925_v52 = vadd.f32 %v1348_v32, %v924_v51 }
 0x1dc   : > { %v955_v55 = vpop.f32.mrf.mxu3 }
 0x1dd   : > { %v1356_v53 = vpop.eup %1355  ;;  %v954_v54 = vadd.f32 %v953_v50, %v925_v52 }
 0x1de   : > { %975 = vst.msk [vmem:[%s1800_s19 + $0x18] sm:$0xff] %vm971_vm1, %v1356_v53 }
 0x1df   : > { %1357 = vtanh.f32 %v954_v54 }
 0x1e2   : > { %v926_v56 = vpop.f32.mrf.mxu2 }
 0x1e3   : > { %v927_v57 = vadd.f32 %v1348_v32, %v926_v56 }
 0x1e4   : > { %v958_v62 = vpop.f32.mrf.mxu3 }
 0x1e5   : > { %v1358_v58 = vpop.eup %1357  ;;  %v956_v61 = vadd.f32 %v955_v55, %v927_v57 }
 0x1e6   : > { %976 = vst.msk [vmem:[%s1800_s19 + $0x20] sm:$0xff] %vm971_vm1, %v1358_v58 }
 0x1e7   : > { %1359 = vtanh.f32 %v956_v61 }
 0x1ea   : > { %v929_v63 = vpop.f32.mrf.mxu2 }
 0x1eb   : > { %v930_v0 = vadd.f32 %v1348_v32, %v929_v63 }
 0x1ec   : > { %v960_v3 = vpop.f32.mrf.mxu3 }
 0x1ed   : > { %v1360_v59 = vpop.eup %1359  ;;  %v959_v60 = vadd.f32 %v958_v62, %v930_v0 }
 0x1ee   : > { %977 = vst.msk [vmem:[%s1800_s19 + $0x28] sm:$0xff] %vm971_vm1, %v1360_v59 }
 0x1ef   : > { %1361 = vtanh.f32 %v959_v60 }
 0x1f2   : > { %v931_v1 = vpop.f32.mrf.mxu2 }
 0x1f3   : > { %v932_v2 = vadd.f32 %v1348_v32, %v931_v1 }
 0x1f5   : > { %v1362_v4 = vpop.eup %1361  ;;  %v961_v6 = vadd.f32 %v960_v3, %v932_v2 }
 0x1f6   : > { %978 = vst.msk [vmem:[%s1800_s19 + $0x30] sm:$0xff] %vm971_vm1, %v1362_v4 }
 0x1f7   : > { %1363 = vtanh.f32 %v961_v6 }
 0x1fd   : > { %v1364_v7 = vpop.eup %1363 }
 0x1fe   : > { %979 = vst.msk [vmem:[%s1800_s19 + $0x38] sm:$0xff] %vm971_vm1, %v1364_v7 }
 0x1ff PF: > { %s18_s24 = sadd.s32 1, %s1405_s24  }
 0x200   : > { %p15_p7 = scmp.ge.s32.totalorder %s18_s24, 4  }
 0x202   :  { %17 = sbr.rel (!%p15_p7) target bundleno = 1 (0x1), region = 83 }
 0x207   :  { %1002 = vsyncpa [#allocation3], 1 }
 0x208   :  { %1004 = vsyncpa [#allocation3 + $0x1], 1 }

</bundles_post_ra>
